<compile_context>
chip_gen: v7x
topology: tpu7x:2x2x1
jax: 0.10.0
libtpu: 0.0.40
codegen_flags: <defaults>
</compile_context>

<pallas_src>
import jax
import jax.numpy as jnp
from jax.experimental import pallas as pl
from jax.experimental.pallas import tpu as pltpu


def _orthogonal_fusion_kernel(g_row_ref, g_col_ref, l_ref, o_ref):
    """One (batch, spatial-tile) grid step.

    g_row_ref : (1, 1, C)      global feature pre-scaled by 1/||g||^2
    g_col_ref : (1, C, 1)      raw global feature
    l_ref     : (1, C, THW)    local feature spatial tile
    o_ref     : (1, 2, C, THW) [.,0]=broadcast global, [.,1]=orthogonal comp
    """
    g_row = g_row_ref[0].astype(jnp.float32)    # (1, C)
    g_col = g_col_ref[0]                        # (C, 1)
    local = l_ref[0]                            # (C, THW)
    C, THW = local.shape

    local_f32 = local.astype(jnp.float32)

    # coeff[s] = sum_c (g[c] / ||g||^2) * local[c, s]   -> (1, THW)
    # M=1 MXU matmul, entirely hidden under the tile DMA.
    coeff = jnp.dot(g_row, local_f32, preferred_element_type=jnp.float32)

    # proj[c, s] = g[c] * coeff[s]  (VPU outer product); orth = local - proj.
    orth = local_f32 - g_col.astype(jnp.float32) * coeff

    # First half of the channel concat: global feature broadcast over space.
    # Emitting the two halves as separate (C, THW) sub-blocks keeps both
    # stores full-width and sublane-aligned even when C % 8 != 0.
    o_ref[0, 0, :, :] = jnp.broadcast_to(g_col, (C, THW)).astype(o_ref.dtype)
    # Second half: orthogonal component.
    o_ref[0, 1, :, :] = orth.astype(o_ref.dtype)


def _vmem_budget_bytes():
    """Generation-aware budget for the double-buffered in+out working set."""
    try:
        cap = pltpu.get_tpu_info().vmem_capacity_bytes
    except Exception:
        cap = 64 << 20  # conservative fallback (v7x per-TC physical VMEM)
    # Leave plenty of headroom for Mosaic internal scratch on every gen:
    # v5e/v6e (128 MiB physical) -> 24 MiB, v7x (64 MiB physical) -> ~21 MiB.
    return min(24 << 20, cap // 3), cap


def _pick_spatial_tile(C, HW, itemsize, vmem_budget_bytes):
    """Largest useful lane-dense (multiple-of-128) spatial tile."""
    hw_ceil = pl.cdiv(HW, 128) * 128
    c = max(C, 1)
    # Double-buffered in + out working set per grid step ~= 6 * C * THW * itemsize.
    thw_budget = vmem_budget_bytes // (6 * c * itemsize)
    # Bytes-based cap (replaces a fixed lane cap): ~6 MiB of HBM traffic
    # (1x read + 2x write) per grid step amortizes the ~0.35 us per-step
    # pipeline overhead; larger tiles buy essentially nothing beyond that.
    thw_target = (6 << 20) // (3 * c * itemsize)
    thw = min(hw_ceil, max(thw_budget, 128), max(thw_target, 128))
    return max(128, (thw // 128) * 128)


def orthogonal_fusion(local_feat, global_feat):
    """local_feat: (B, C, H, W), global_feat: (B, C) -> (B, 2C, H, W)."""
    B, C, H, W = local_feat.shape
    HW = H * W
    itemsize = jnp.dtype(local_feat.dtype).itemsize

    budget, vmem_cap = _vmem_budget_bytes()
    thw = _pick_spatial_tile(C, HW, itemsize, budget)
    n_hw = pl.cdiv(HW, thw)

    # Free views: contiguous reshapes only, no data movement.
    local_flat = local_feat.reshape(B, C, HW)
    g_col = global_feat.reshape(B, C, 1)

    # Fold 1/||g||^2 into a pre-scaled row copy of the global feature
    # (trivial (B, C) op), removing the per-tile reduction + reciprocal from
    # the kernel body.  No epsilon, matching the PyTorch reference.
    g_f32 = global_feat.astype(jnp.float32)
    g_norm_sq = jnp.sum(g_f32 * g_f32, axis=1, keepdims=True)       # (B, 1)
    g_row_scaled = (g_f32 / g_norm_sq).reshape(B, 1, C)

    # Explicit scoped-VMEM limit: chosen working set plus headroom, kept well
    # under physical VMEM on every generation.
    working_set = 6 * C * thw * itemsize + (1 << 20)
    vmem_limit = int(max(8 << 20, min(working_set + (4 << 20), vmem_cap - (8 << 20))))

    cost = pl.CostEstimate(
        flops=4 * B * C * HW,
        transcendentals=0,
        bytes_accessed=(3 * B * C * HW + 3 * B * C) * itemsize,
    )

    out = pl.pallas_call(
        _orthogonal_fusion_kernel,
        out_shape=jax.ShapeDtypeStruct((B, 2, C, HW), local_feat.dtype),
        grid_spec=pltpu.PrefetchScalarGridSpec(
            num_scalar_prefetch=0,
            grid=(B, n_hw),
            in_specs=[
                # Global-feature views: constant along the HW axis -> DMA'd
                # only when the batch index changes, never per spatial tile.
                pl.BlockSpec((1, 1, C), lambda b, s: (b, 0, 0)),
                pl.BlockSpec((1, C, 1), lambda b, s: (b, 0, 0)),
                # Local-feature spatial tile (ragged last tile handled by
                # Pallas: padded read, masked writeback -- no wrapper pad).
                pl.BlockSpec((1, C, thw), lambda b, s: (b, 0, s)),
            ],
            out_specs=pl.BlockSpec((1, 2, C, thw), lambda b, s: (b, 0, 0, s)),
        ),
        compiler_params=pltpu.CompilerParams(
            dimension_semantics=("parallel", "parallel"),
            vmem_limit_bytes=vmem_limit,
        ),
        cost_estimate=cost,
    )(g_row_scaled, g_col, local_flat)

    # (B, 2, C, HW) -> (B, 2C, H, W): pure metadata reshape, no copy.
    return out.reshape(B, 2 * C, H, W)


def _reference(local_feat, global_feat):
    B, C, H, W = local_feat.shape
    l_flat = local_feat.reshape(B, C, H * W)
    g_norm_sq = jnp.sum(global_feat * global_feat, axis=1)          # (B,)
    coeff = jnp.einsum("bc,bcs->bs", global_feat, l_flat)           # (B, HW)
    proj = jnp.einsum("bc,bs->bcs", global_feat, coeff)             # (B, C, HW)
    proj = proj / g_norm_sq[:, None, None]
    orth = (l_flat - proj).reshape(B, C, H, W)
    g_bcast = jnp.broadcast_to(global_feat[:, :, None, None], (B, C, H, W))
    return jnp.concatenate([g_bcast, orth], axis=1)


if __name__ == "__main__":
    key = jax.random.PRNGKey(0)
    k1, k2, k3, k4 = jax.random.split(key, 4)

    # Primary check: H*W a multiple of 128 (single aligned spatial tile).
    B, C, H, W = 2, 4, 16, 16
    local_feat = jax.random.normal(k1, (B, C, H, W), dtype=jnp.float32)
    global_feat = jax.random.normal(k2, (B, C), dtype=jnp.float32)

    out = orthogonal_fusion(local_feat, global_feat)
    jax.block_until_ready(out)

    ref = _reference(local_feat, global_feat)
    assert out.shape == (B, 2 * C, H, W), out.shape
    assert jnp.allclose(out, ref, atol=1e-5, rtol=1e-5), "mismatch vs reference"

    # Secondary check: H*W not a multiple of 128 exercises the ragged-tile
    # (padded read / masked writeback) path -- no wrapper pad or slice.
    B2, C2, H2, W2 = 2, 4, 6, 6
    local_feat2 = jax.random.normal(k3, (B2, C2, H2, W2), dtype=jnp.float32)
    global_feat2 = jax.random.normal(k4, (B2, C2), dtype=jnp.float32)

    out2 = orthogonal_fusion(local_feat2, global_feat2)
    jax.block_until_ready(out2)

    ref2 = _reference(local_feat2, global_feat2)
    assert out2.shape == (B2, 2 * C2, H2, W2), out2.shape
    assert jnp.allclose(out2, ref2, atol=1e-5, rtol=1e-5), "mismatch vs reference (ragged)"

    print("KERNEL_OK")
</pallas_src>

<mosaic_0001>
module attributes {stable_mosaic.version = 11 : i64} {
  func.func @_orthogonal_fusion_kernel(%arg0: i32, %arg1: i32, %arg2: memref<1x1x4xf32, #tpu.memory_space<vmem>>, %arg3: memref<1x4x1xf32, #tpu.memory_space<vmem>>, %arg4: memref<1x4x256xf32, #tpu.memory_space<vmem>>, %arg5: memref<1x2x4x256xf32, #tpu.memory_space<vmem>>) attributes {dimension_semantics = [#tpu.dimension_semantics<parallel>, #tpu.dimension_semantics<parallel>], iteration_bounds = array<i64: 2, 1>, scalar_prefetch = 0 : i64, scratch_operands = 0 : i64, tpu.core_type = #tpu.core_type<tc>, window_params = [{transform_indices = @transform_0, window_bounds = array<i64: 1, 1, 4>}, {transform_indices = @transform_1, window_bounds = array<i64: 1, 4, 1>}, {transform_indices = @transform_2, window_bounds = array<i64: 1, 4, 256>}, {transform_indices = @transform_3, window_bounds = array<i64: 1, 2, 4, 256>}]} {
    %c0 = arith.constant 0 : index
    %c0_0 = arith.constant 0 : index
    %c0_1 = arith.constant 0 : index
    %0 = vector.load %arg2[%c0, %c0_0, %c0_1] : memref<1x1x4xf32, #tpu.memory_space<vmem>>, vector<1x1x4xf32>
    %1 = vector.shape_cast %0 : vector<1x1x4xf32> to vector<1x4xf32>
    %c0_2 = arith.constant 0 : index
    %c0_3 = arith.constant 0 : index
    %c0_4 = arith.constant 0 : index
    %2 = vector.load %arg3[%c0_2, %c0_3, %c0_4] : memref<1x4x1xf32, #tpu.memory_space<vmem>>, vector<1x4x1xf32>
    %3 = vector.shape_cast %2 : vector<1x4x1xf32> to vector<4x1xf32>
    %c0_5 = arith.constant 0 : index
    %c0_6 = arith.constant 0 : index
    %c0_7 = arith.constant 0 : index
    %4 = vector.load %arg4[%c0_5, %c0_6, %c0_7] : memref<1x4x256xf32, #tpu.memory_space<vmem>>, vector<1x4x256xf32>
    %5 = vector.shape_cast %4 : vector<1x4x256xf32> to vector<4x256xf32>
    %cst = arith.constant dense<0.000000e+00> : vector<1x256xf32>
    %6 = tpu.matmul %1, %5, %cst {dimension_numbers = #tpu.dot_dimension_numbers<[1], [0], [0], [1], [0, 0, 1, 1], [], []>} : vector<1x4xf32>, vector<4x256xf32>, vector<1x256xf32> -> vector<1x256xf32>
    %7 = vector.broadcast %3 : vector<4x1xf32> to vector<4x256xf32>
    %8 = vector.broadcast %6 : vector<1x256xf32> to vector<4x256xf32>
    %9 = arith.mulf %7, %8 : vector<4x256xf32>
    %10 = arith.subf %5, %9 : vector<4x256xf32>
    %11 = vector.shape_cast %3 : vector<4x1xf32> to vector<4x1xf32>
    %12 = vector.broadcast %11 : vector<4x1xf32> to vector<4x256xf32>
    %c0_8 = arith.constant 0 : index
    %c0_9 = arith.constant 0 : index
    %c0_10 = arith.constant 0 : index
    %c0_11 = arith.constant 0 : index
    %13 = vector.load %arg5[%c0_8, %c0_9, %c0_10, %c0_11] : memref<1x2x4x256xf32, #tpu.memory_space<vmem>>, vector<1x1x4x256xf32>
    %14 = vector.shape_cast %13 : vector<1x1x4x256xf32> to vector<4x256xf32>
    %15 = vector.shape_cast %12 : vector<4x256xf32> to vector<1x1x4x256xf32>
    tpu.vector_store %arg5[%c0_8, %c0_9, %c0_10, %c0_11], %15 {strides = array<i32>} : memref<1x2x4x256xf32, #tpu.memory_space<vmem>>, vector<1x1x4x256xf32>,
    %c0_12 = arith.constant 0 : index
    %c1 = arith.constant 1 : index
    %c0_13 = arith.constant 0 : index
    %c0_14 = arith.constant 0 : index
    %16 = vector.load %arg5[%c0_12, %c1, %c0_13, %c0_14] : memref<1x2x4x256xf32, #tpu.memory_space<vmem>>, vector<1x1x4x256xf32>
    %17 = vector.shape_cast %16 : vector<1x1x4x256xf32> to vector<4x256xf32>
    %18 = vector.shape_cast %10 : vector<4x256xf32> to vector<1x1x4x256xf32>
    tpu.vector_store %arg5[%c0_12, %c1, %c0_13, %c0_14], %18 {strides = array<i32>} : memref<1x2x4x256xf32, #tpu.memory_space<vmem>>, vector<1x1x4x256xf32>,
    return
  }
  func.func @transform_0(%arg0: i32, %arg1: i32) -> (i32, i32, i32) {
    %c0_i32 = arith.constant 0 : i32
    %c0_i32_0 = arith.constant 0 : i32
    %c0_i32_1 = arith.constant 0 : i32
    return %arg0, %c0_i32, %c0_i32_0 : i32, i32, i32
  }
  func.func @transform_1(%arg0: i32, %arg1: i32) -> (i32, i32, i32) {
    %c0_i32 = arith.constant 0 : i32
    %c0_i32_0 = arith.constant 0 : i32
    %c0_i32_1 = arith.constant 0 : i32
    return %arg0, %c0_i32, %c0_i32_0 : i32, i32, i32
  }
  func.func @transform_2(%arg0: i32, %arg1: i32) -> (i32, i32, i32) {
    %c0_i32 = arith.constant 0 : i32
    %c0_i32_0 = arith.constant 0 : i32
    return %arg0, %c0_i32, %arg1 : i32, i32, i32
  }
  func.func @transform_3(%arg0: i32, %arg1: i32) -> (i32, i32, i32, i32) {
    %c0_i32 = arith.constant 0 : i32
    %c0_i32_0 = arith.constant 0 : i32
    %c0_i32_1 = arith.constant 0 : i32
    return %arg0, %c0_i32, %c0_i32_0, %arg1 : i32, i32, i32, i32
  }
}

</mosaic_0001>

<bundles_post_ra>
// kernel: tpu_custom_call.1
= control target key start
LH: loop header
LB: loop body
LE: loop exit
PB: predicated region body
PF: predicated region fallthrough
CT: control target
= control target key end

     0   :  { %8 = vsyncpa [#allocation3], 0  ;;  %s908_s0 = inlined_call_operand.hbm [shape: f32[2,1,4], index: 0, kind: input, shape index: {}]   ;;  %s909_s1 = inlined_call_operand.vmem [shape: f32[2,4,1], index: 1, kind: input, shape index: {}]   ;;  %s910_s2 = inlined_call_operand.vmem [shape: f32[2,4,256], index: 2, kind: input, shape index: {}]   ;;  %s911_s3 = inlined_call_operand.hbm [shape: f32[2,2,4,256], index: 3, kind: output, shape index: {}]  }
   0x1   :  { %10 = vsyncpa [#allocation3 + $0x1], 0 }
   0x2   :  { %11 = vsyncpa [#allocation4], 0 }
   0x3   :  { %13 = vsyncpa [#allocation4 + $0x1], 0  ;;  %s725_s12 = smov 0   ;;  %s727_s13 = smov 0  }
   0x4   :  { %s729_s14 = smov 0   ;;  %s731_s15 = smov 0  }
   0x5   :  { %s733_s16 = smov 0   ;;  %s735_s17 = smov 0  }
   0x6 LB: > { %s494_s18 = sadd.s32 4294967295, %s696_s17   ;;  %s495_s19 = sadd.s32 4294967294, %s696_s17   ;;  %s696_s17 = sphi %s735_s17, %s19_s17   ;;  %s692_s16 = sphi %s733_s16, %s927_s16   ;;  %s688_s15 = sphi %s731_s15, %s926_s15   ;;  %s684_s14 = sphi %s729_s14, %s925_s14   ;;  %s680_s13 = sphi %s727_s13, %s924_s13   ;;  %s676_s12 = sphi %s725_s12, %s923_s12  }
   0x7   : > { %s31_s20 = sadd.s32 1, %s692_s16  ;;  %s38_s21 = sadd.s32 1, %s684_s14 }
   0x8   : > { %p33_p0 = scmp.ge.s32.totalorder %s31_s20, 2  ;;  %p45_p1 = scmp.ne.s32.totalorder %s684_s14, %s680_s13 }
   0x9   : > { %p46_p2 = scmp.eq.s32.totalorder %s696_s17, 0  ;;  %p51_p3 = scmp.ne.s32.totalorder %s680_s13, %s676_s12 }
   0xa   : > { %s929_s20 = smov (%p33_p0, %s31_s20), 0  ;;  %p52_p5 = scmp.eq.s32.totalorder %s494_s18, 0 }
   0xb   : > { %p766_p4 = por %p46_p2, %p45_p1  ;;  %s35_s23 = ssub.s32 %s692_s16, %s929_s20 }
   0xc   : > { %p131_p6 = scmp.eq.s32.totalorder %s494_s18, 1  ;;  %p36_p7 = scmp.eq.s32.totalorder %s35_s23, 0 }
   0xd   : > { %p772_p8 = por %p52_p5, %p51_p3  ;;  %p137_p10 = scmp.eq.s32.totalorder %s495_s19, 1 }
   0xe   : > { %p776_p9 = por %p131_p6, %p45_p1  ;;  %p527_p13 = scmp.lt.s32.totalorder %s696_s17, 2 }
   0xf   : > { %s781_s26 = scalar_select %p36_p7, %s684_s14, %s38_s21  }
  0x10   : > { %s915_s25 = scalar_select %p776_p9, 1, 0 }
  0x11   : > { %p783_p11 = por %p137_p10, %p51_p3  ;;  %s157_s28 = sand.u32 1, %s684_s14  }
  0x12   : > { %s498_s29 = sshll.u32 %s692_s16, 4  ;;  %s160_s30 = scalar_lea.vmem [#allocation2], %s157_s28 }
  0x13   : > { %s916_s27 = scalar_select %p783_p11, 1, 0 }
  0x14   : > { %s167_s4 = sshll.u32 %s160_s30, 4  ;;  %s794_s7 = scalar_lea.hbm %s908_s0, %s498_s29  ;;  %s796_s4 = int_to_ptr.vmem [resolvable:$true] %s167_s4 }
  0x15   : > { %p800_p0 = pnand %p527_p13, %p766_p4  ;;  %s158_s9 = scalar_lea.sflag [#allocation3], %s157_s28 }
  0x16   : > { %s584_s10 = scalar_lea.hbm %s794_s7, 16  ;;  %s589_s19 = scalar_lea.hbm %s908_s0, 32 }
  0x17   : > { %p585_p3 = scmp.ne.s32.totalorder %s794_s7, %s584_s10  ;;  %p586_p5 = pneg %p800_p0 }
  0x18   : > { %p590_p4 = scmp.lt.u32.totalorder %s794_s7, %s908_s0  ;;  %p591_p10 = scmp.lt.u32.totalorder %s589_s19, %s584_s10 }
  0x19   : > { %p587_p6 = pnand %p586_p5, %p585_p3  ;;  %p593_p12 = scmp.lt.u32.totalorder %s584_s10, %s794_s7 }
  0x1a   : > { %p592_p13 = por %p591_p10, %p590_p4 }
  0x1b   : > { %p588_p7 = pneg %p587_p6 }
  0x1c   : > { %p594_p1 = por %p593_p12, %p592_p13 }
  0x1e   : > { %p595_p2 = pnand %p594_p1, %p588_p7 }
  0x20   : > { %598 = shalt.err (!%p595_p2)
}
  0x21   : > { %s599_s23 = scalar_lea.vmem %s796_s4, 16  ;;  %s698_s28 = smov [#allocation2]  }
  0x22   : > { %p600_p3 = scmp.ne.s32.totalorder %s796_s4, %s599_s23  ;;  %s604_s29 = sshll.u32 %s698_s28, 4  ;;  %s605_s29 = int_to_ptr.vmem [resolvable:$false] %s604_s29 }
  0x23   : > { %s606_s30 = scalar_lea.vmem %s605_s29, 32  ;;  %p607_p9 = scmp.lt.s32.totalorder %s796_s4, %s605_s29 }
  0x24   : > { %p602_p6 = pnand %p600_p3, %p586_p5  ;;  %p608_p4 = scmp.lt.s32.totalorder %s606_s30, %s599_s23 }
  0x26   : > { %p603_p11 = pneg %p602_p6  ;;  %p609_p10 = por %p608_p4, %p607_p9 }
  0x28   : > { %p610_p12 = pnand %p609_p10, %p603_p11 }
  0x2a   : > { %613 = shalt.err (!%p610_p12)
}
  0x2b   : > { %522 = dma.hbm_to_vmem [thread:$0]  (!%p800_p0), %s794_s7, 16, %s796_s4, %s158_s9  }
  0x2c   : > { %p918_p1 = scmp.lt.s32.totalorder %s696_s17, 3  ;;  %p919_p2 = scmp.ge.s32.totalorder %s696_s17, 1 }
  0x2e   : > { %p193_p5 = pnand %p919_p2, %p918_p1 }
  0x2f   : > { %s836_s5 = sand.u32 (!%p193_p5), 1, %s680_s13  }
  0x30   : > { %196 = sbr.rel (%p193_p5) target bundleno = 303 (0x12f), region = 32  ;;  %s199_s6 = scalar_lea.sflag (!%p193_p5), [#allocation3], %s836_s5 }
  0x31   : > { %s201_s10 = scalar_lea.vmem (!%p193_p5), [#allocation2], %s836_s5 }
  0x37   : > { %667 = dma.done.wait (%p772_p8), %s199_s6, 16  }
  0x38   : > { %669 = vsyncadd (%p772_p8), %s199_s6, 4294967280  ;;  %p236_p9 = scmp.lt.s32.totalorder %s688_s15, 1  ;;  %v699_v0 = vmov 0.0   ;;  %v700_v1 = vmov 0   ;;  %vm260_vm0 = vcmask 1043456   ;;  %vm256_vm1 = vcmask 31744  }
  0x39   : > { %329 = vmatprep.mubr.f32.mxu0 %v699_v0  ;;  %582 = vset.pattern.permute.xlu0 %v700_v1  ;;  %v251_v5 = vld [vmem:[%s201_s10] sm:$0x1]  ;;  %v701_v6 = vmov 839922192   ;;  %v341_v8 = vlaneseq  ;;  %s500_s24 = sshll.u32 %s836_s5, 4  ;;  %s514_s29 = sshll.u32 %s688_s15, 8 }
  0x3a   : > { %s237_s4 = scalar_select %p236_p9, %s688_s15, 1  ;;  %v357_v7 = vunpack.c.l.s4 %v701_v6 }
  0x3b   : > { %v342_v10 = vshrl.u32 %v341_v8, 7  ;;  %s235_s23 = scalar_lea.vmem [#allocation5], %s500_s24  ;;  %s859_s10 = scalar_lea.hbm %s911_s3, %s514_s29 }
  0x3c   : > { %s513_s7 = sshll.u32 %s237_s4, 3  ;;  %s501_s8 = sshll.u32 %s237_s4, 2  ;;  %v358_v9 = vunpack.c.0.s8 %v357_v7 }
  0x3d   : > { %s248_s18 = scalar_lea.vmem %s910_s2, %s513_s7  ;;  %s239_s22 = scalar_lea.vmem %s909_s1, %s501_s8  ;;  %v343_v14 = vsub.s32 0, %v342_v10 }
  0x3e   : > { %v253_v2 = vld [vmem:[%s248_s18] sm:$0xff]  ;;  %v361_v11 = vsub.s32 %v358_v9, %v342_v10  ;;  %s383_s28 = sshll.u32 %s235_s23, 4  ;;  %s368_s4 = scalar_lea.sflag [#allocation4], %s836_s5  ;;  %s854_s28 = int_to_ptr.vmem [resolvable:$true] %s383_s28 }
  0x3f   : > { %v252_v3 = vld [vmem:[%s239_s22] sm:$0xf]  ;;  %v255_v4 = vcombine.high %v253_v2, %v253_v2  ;;  %s614_s7 = scalar_lea.vmem %s854_s28, 256  ;;  %p920_p11 = scmp.ne.s32.totalorder %s915_s25, 0 }
  0x40   : > { %338 = vperm.xlu0 %582, %v252_v3   ;;  %p615_p8 = scmp.ne.s32.totalorder %s854_s28, %s614_s7  ;;  %s702_s15 = smov [#allocation5]  }
  0x41   : > { %504 = vmatprep.subr.msk.mxu0 %vm260_vm0, %v255_v4  ;;  %s618_s8 = sshll.u32 %s702_s15, 4  ;;  %s619_s8 = int_to_ptr.vmem [resolvable:$false] %s618_s8 }
  0x42   : > { %505 = vmatpush1.msk.msra.mxu0 %vm260_vm0, %v253_v2  ;;  %p616_p0 = pnand %p615_p8, %p920_p11  ;;  %s620_s9 = scalar_lea.vmem %s619_s8, 512 }
  0x43   : > { %506 = vmatmul.mubr.msk.f32.vlgmr.msra.gmra.mrb[0].mxu0 %vm256_vm1, %v251_v5  ;;  %p621_p13 = scmp.lt.s32.totalorder %s854_s28, %s619_s8  ;;  %p622_p3 = scmp.lt.s32.totalorder %s620_s9, %s614_s7 }
  0x44   : > { %p617_p7 = pneg %p616_p0 }
  0x45   : > { %p623_p6 = por %p622_p3, %p621_p13 }
  0x47   : > { %p624_p4 = pnand %p623_p6, %p617_p7 }
  0xbf   : > { %v339_v12 = vpop.permute.xlu0 %338 }
  0xc0   : > { %v362_v13 = vrot.slane %v339_v12, %v361_v11 }
  0xc2   : > { %364 = vst [vmem:[%s235_s23] sm:$0xff] %v362_v13 }
 0x116   : > { %v331_v15 = vpop.f32.mrb[0].mxu0 }
 0x117   : > { %v344_v16 = vrot.slane %v331_v15, %v343_v14  ;;  %v333_v17 = vpop.f32.mrb[1].mxu0 }
 0x118   : > { %v348_v18 = vrot.slane %v333_v17, %v343_v14 }
 0x119   : > { %v349_v19 = vmul.f32 %v344_v16, %v339_v12 }
 0x11a   : > { %v350_v20 = vmul.f32 %v348_v18, %v339_v12 }
 0x11c   : > { %v353_v21 = vcombine.low %v349_v19, %v350_v20 }
 0x11e   : > { %v355_v22 = vsub.f32 %v253_v2, %v353_v21 }
 0x120   : > { %507 = vst [vmem:[%s235_s23 + $0x8] sm:$0xff] %v355_v22 }
 0x121   : > { %627 = shalt.err (!%p624_p4)
}
 0x122   : > { %s628_s11 = scalar_lea.hbm %s859_s10, 256  ;;  %s632_s21 = scalar_lea.hbm %s911_s3, 512 }
 0x123   : > { %p629_p10 = scmp.ne.s32.totalorder %s859_s10, %s628_s11  ;;  %p633_p2 = scmp.lt.u32.totalorder %s859_s10, %s911_s3 }
 0x124   : > { %p634_p5 = scmp.lt.u32.totalorder %s632_s21, %s628_s11  ;;  %p636_p8 = scmp.lt.u32.totalorder %s628_s11, %s859_s10 }
 0x125   : > { %p630_p12 = pnand %p629_p10, %p920_p11 }
 0x126   : > { %p635_p9 = por %p634_p5, %p633_p2 }
 0x127   : > { %p631_p1 = pneg %p630_p12 }
 0x128   : > { %p637_p0 = por %p636_p8, %p635_p9 }
 0x12a   : > { %p638_p7 = pnand %p637_p0, %p631_p1 }
 0x12c   : > { %641 = shalt.err (!%p638_p7)
}
 0x12d   : > { %s703_s23 = smov 128   ;;  %s704_s29 = smov 8  }
 0x12e   : > { %517 = dma.vmem_to_hbm [thread:$0]  (%p920_p11), %s854_s28, 256, %s859_s10, %s368_s4, %s703_s23, %s703_s23, %s704_s29  }
 0x12f PF: > { %s398_s30 = sand.u32 1, %s676_s12   ;;  %p921_p13 = scmp.ne.s32.totalorder %s916_s27, 0 }
 0x130   : > { %p922_p3 = scmp.ge.s32.totalorder %s696_s17, 2  ;;  %s399_s6 = scalar_lea.sflag [#allocation4], %s398_s30 }
 0x132   : > { %p524_p6 = pnand %p922_p3, %p921_p13 }
 0x134   : > { %671 = dma.done.wait (!%p524_p6), %s399_s6, 256  }
 0x135   : > { %673 = vsyncadd (!%p524_p6), %s399_s6, 4294967040  ;;  %s19_s17 = sadd.s32 1, %s696_s17   ;;  %s923_s12 = smov %s680_s13 }
 0x136   : > { %p16_p4 = scmp.ge.s32.totalorder %s19_s17, 4   ;;  %s924_s13 = smov %s684_s14 }
 0x137   : > { %s925_s14 = smov %s781_s26  ;;  %s926_s15 = smov %s692_s16 }
 0x138   : > { %s927_s16 = smov %s929_s20  ;;  %18 = sbr.rel (!%p16_p4) target bundleno = 6 (0x6), region = 84 }
 0x13f   :  { %404 = vsyncpa [#allocation3], 1 }
 0x140   :  { %406 = vsyncpa [#allocation3 + $0x1], 1 }
 0x141   :  { %407 = vsyncpa [#allocation4], 1 }
 0x142   :  { %409 = vsyncpa [#allocation4 + $0x1], 1 }

</bundles_post_ra>
